<compile_context>
chip_gen: v7x
topology: tpu7x:2x2x1
jax: 0.10.0
libtpu: 0.0.40
codegen_flags: <defaults>
</compile_context>

<pallas_src>
from functools import partial

import jax
import jax.numpy as jnp
import numpy as np
from jax import lax
from jax.experimental import pallas as pl
from jax.experimental.pallas import tpu as pltpu

# ---------------- generator configuration (from Config) ----------------------
BEAM_SIZE = 2
TARGETLEN_CAP = 100
TARGETLEN_A = 0.0
TARGETLEN_B = 2.0
TARGETLEN_C = 2.0
LENGTH_PENALTY = 0.25
NBEST = 2
STOP_AT_EOS = True
EOS_TOKEN = 2

# synthetic seq2seq model dims (lane-friendly)
EMB = 128
HID = 128
VOCAB = 128
BEAM_PAD = 8        # beam rows padded to a full sublane group
S_PAD = 16          # source positions padded

NEG_INF = -1.0e30
BIG = 1.0e9


def get_target_length(src_len, cap, a, b, c):
    tl = int(min(cap, src_len * a * a + src_len * b + c))
    assert tl > 0, "Target length cannot be less than 0"
    return tl


# ------------------------------ fused decoder kernel --------------------------
def fused_decoder_kernel(src_emb_ref, mask_ref, embed_ref, w_enc_ref, b_enc_ref,
                         w_ih_ref, w_hh_ref, b_h_ref, w_out_ref, b_out_ref,
                         tok_out_ref, score_out_ref, prev_out_ref, attn_out_ref,
                         enc_s, encT_s):
    T = tok_out_ref.shape[0]          # static target length

    # ---- one-time prologue: encoder projection (+ its transpose) ----
    enc = jnp.tanh(
        jnp.dot(src_emb_ref[...], w_enc_ref[...],
                preferred_element_type=jnp.float32) + b_enc_ref[...])     # (16,128)
    enc_s[...] = enc
    encT_s[...] = jnp.transpose(enc)                                      # (128,16)

    mask = mask_ref[...]                                                  # (1,16)

    # ---- loop-invariant iotas / masks (hoisted; JAX does not CSE these) ----
    row_col = lax.broadcasted_iota(jnp.int32, (BEAM_PAD, 1), 0).astype(jnp.float32)
    col_voc = lax.broadcasted_iota(jnp.int32, (BEAM_PAD, VOCAB), 1).astype(jnp.float32)
    is_row0 = row_col < 1.0                                               # (8,1)
    beam_rows = row_col < float(BEAM_SIZE)                                # (8,1)
    flat = row_col * float(VOCAB) + col_voc                               # (8,128)
    flat0 = flat[0:1, :]                                                  # (1,128)
    flat1 = flat[1:2, :]                                                  # (1,128)

    def step(t, carry):
        hid, score, tok = carry       # (8,128) f32, (8,1) f32, (8,1) f32

        # ---- embedding of previous beam tokens via one-hot matmul ----
        onehot = jnp.where(jnp.logical_and(col_voc == tok, beam_rows), 1.0, 0.0)
        prev_emb = jnp.dot(onehot, embed_ref[...],
                           preferred_element_type=jnp.float32)            # (8,128)

        # ---- recurrent hidden state: two 128x128 matmuls, no VMEM staging ----
        h = jnp.tanh(
            jnp.dot(prev_emb, w_ih_ref[...], preferred_element_type=jnp.float32)
            + jnp.dot(hid, w_hh_ref[...], preferred_element_type=jnp.float32)
            + b_h_ref[...])                                               # (8,128)

        # ---- attention over encoder states (encT precomputed, exact softmax) --
        att = jnp.dot(h, encT_s[...],
                      preferred_element_type=jnp.float32) + mask          # (8,16)
        am = jnp.max(att, axis=-1, keepdims=True)
        ae = jnp.exp(att - am)
        attn = ae / jnp.sum(ae, axis=-1, keepdims=True)                   # exported
        ctx = jnp.dot(attn, enc_s[...], preferred_element_type=jnp.float32)

        # ---- output projection; log-softmax folded into one per-row term ----
        logits = (jnp.dot(h + ctx, w_out_ref[...],
                          preferred_element_type=jnp.float32) + b_out_ref[...])
        lm = jnp.max(logits, axis=-1, keepdims=True)
        lse = jnp.log(jnp.sum(jnp.exp(logits - lm), axis=-1, keepdims=True))
        cand = logits + (score - lm - lse)                                # (8,128)

        limit = jnp.where(t == 0, 1.0, float(BEAM_SIZE))   # step 0: beam 0 only
        candm = jnp.where(row_col < limit, cand, NEG_INF)

        # ---- top-2: collapse the 2 valid rows with VPU max, then lane reduce --
        r0 = candm[0:1, :]
        r1 = candm[1:2, :]
        cmax = jnp.maximum(r0, r1)                                        # (1,128)
        cflat = jnp.where(r0 >= r1, flat0, flat1)
        s1 = jnp.max(cmax, axis=-1, keepdims=True)                        # (1,1)
        f1 = jnp.min(jnp.where(cmax == s1, cflat, BIG), axis=-1, keepdims=True)

        r0b = jnp.where(flat0 == f1, NEG_INF, r0)
        r1b = jnp.where(flat1 == f1, NEG_INF, r1)
        cmax2 = jnp.maximum(r0b, r1b)
        cflat2 = jnp.where(r0b >= r1b, flat0, flat1)
        s2 = jnp.max(cmax2, axis=-1, keepdims=True)
        f2 = jnp.min(jnp.where(cmax2 == s2, cflat2, BIG), axis=-1, keepdims=True)

        # flat index range < 256, exact in f32 for VOCAB=128 / BEAM=2.
        prev1 = jnp.floor(f1 / float(VOCAB)); tok1 = f1 - prev1 * float(VOCAB)
        prev2 = jnp.floor(f2 / float(VOCAB)); tok2 = f2 - prev2 * float(VOCAB)

        new_score = jnp.where(is_row0, s1, s2)                            # (8,1)
        new_tok = jnp.where(is_row0, tok1, tok2)                          # (8,1)
        new_prev = jnp.where(is_row0, prev1, prev2)                       # (8,1)

        # ---- reorder hidden state / attention by prev index (beam=2 -> select)
        take0 = new_prev < 0.5
        new_hid = jnp.where(take0, h[0:1, :], h[1:2, :])                  # (8,128)
        attn_sel = jnp.where(take0, attn[0:1, :], attn[1:2, :])           # (8,16)

        # ---- per-step results accumulate in VMEM outputs; one HBM writeback --
        tok_out_ref[pl.ds(t, 1), :, :] = new_tok[None]
        score_out_ref[pl.ds(t, 1), :, :] = new_score[None]
        prev_out_ref[pl.ds(t, 1), :, :] = new_prev[None]
        attn_out_ref[pl.ds(t, 1), :, :] = attn_sel[None]

        return (new_hid, new_score, new_tok)

    hid0 = jnp.zeros((BEAM_PAD, HID), jnp.float32)
    score0 = jnp.zeros((BEAM_PAD, 1), jnp.float32)
    tok0 = jnp.full((BEAM_PAD, 1), float(EOS_TOKEN), jnp.float32)
    lax.fori_loop(0, T, step, (hid0, score0, tok0))


def make_fused_decoder(target_length):
    vspec = pl.BlockSpec(memory_space=pltpu.MemorySpace.VMEM)

    flops_per_step = 2 * BEAM_PAD * (VOCAB * EMB          # one-hot embed
                                     + EMB * HID + HID * HID  # recurrence
                                     + HID * S_PAD            # attn scores
                                     + S_PAD * HID            # context
                                     + HID * VOCAB)           # output proj
    return pl.pallas_call(
        fused_decoder_kernel,
        in_specs=[vspec] * 10,
        out_specs=(vspec, vspec, vspec, vspec),
        out_shape=(
            jax.ShapeDtypeStruct((target_length, BEAM_PAD, 1), jnp.float32),      # tok
            jax.ShapeDtypeStruct((target_length, BEAM_PAD, 1), jnp.float32),      # score
            jax.ShapeDtypeStruct((target_length, BEAM_PAD, 1), jnp.float32),      # prev
            jax.ShapeDtypeStruct((target_length, BEAM_PAD, S_PAD), jnp.float32),  # attn
        ),
        scratch_shapes=[
            pltpu.VMEM((S_PAD, HID), jnp.float32),     # enc
            pltpu.VMEM((HID, S_PAD), jnp.float32),     # enc^T (one-time transpose)
        ],
        cost_estimate=pl.CostEstimate(
            flops=int(flops_per_step * target_length + 2 * S_PAD * EMB * HID),
            transcendentals=int(BEAM_PAD * (HID + S_PAD + VOCAB + 2) * target_length
                                + S_PAD * HID),
            bytes_accessed=int(400_000
                               + target_length * BEAM_PAD * (3 + S_PAD) * 4),
        ),
    )


# ------------------------------ parameters ------------------------------------
def init_params(key):
    ks = jax.random.split(key, 7)
    scale = 0.1
    return dict(
        embed=scale * jax.random.normal(ks[0], (VOCAB, EMB), jnp.float32),
        w_enc=scale * jax.random.normal(ks[1], (EMB, HID), jnp.float32),
        b_enc=jnp.zeros((1, HID), jnp.float32),
        w_ih=scale * jax.random.normal(ks[2], (EMB, HID), jnp.float32),
        w_hh=scale * jax.random.normal(ks[3], (HID, HID), jnp.float32),
        b_h=jnp.zeros((1, HID), jnp.float32),
        w_out=scale * jax.random.normal(ks[4], (HID, VOCAB), jnp.float32),
        b_out=jnp.zeros((1, VOCAB), jnp.float32),
    )


# ------------------------------ BeamSearch ------------------------------------
@partial(jax.jit, static_argnums=(2,))
def beam_search_device(src_tokens_p, src_len, target_length, params):
    p = params
    pos = jnp.arange(S_PAD)[:, None]
    src_emb_p = jnp.where(pos < src_len,
                          jnp.take(p["embed"], src_tokens_p, axis=0),
                          0.0).astype(jnp.float32)                      # (S_PAD, EMB)
    mask = jnp.where(jnp.arange(S_PAD) < src_len, 0.0, -1e9
                     ).astype(jnp.float32)[None, :]                     # (1, S_PAD)

    toks, scores, prevs, weights = make_fused_decoder(target_length)(
        src_emb_p, mask, p["embed"], p["w_enc"], p["b_enc"],
        p["w_ih"], p["w_hh"], p["b_h"], p["w_out"], p["b_out"])

    return (toks[:, :BEAM_SIZE, 0], scores[:, :BEAM_SIZE, 0],
            prevs[:, :BEAM_SIZE, 0], weights[:, :BEAM_SIZE, :])


def beam_search(src_tokens, src_len, target_length, params):
    """Returns (all_tokens, all_scores, all_weights, all_prev_indices),
    each with a leading axis of target_length + 1 (row 0 = EOS init)."""
    S = int(src_tokens.shape[0])
    src_tokens_p = jnp.zeros((S_PAD,), jnp.int32).at[:S].set(src_tokens)

    toks_f, scores, prevs_f, weights = beam_search_device(
        src_tokens_p, jnp.asarray(src_len, jnp.int32), target_length, params)

    toks = jnp.round(toks_f).astype(jnp.int32)       # exact integers in f32
    prevs = jnp.round(prevs_f).astype(jnp.int32)

    init_tok = jnp.full((1, BEAM_SIZE), EOS_TOKEN, jnp.int32)
    init_score = jnp.zeros((1, BEAM_SIZE), jnp.float32)
    init_prev = jnp.arange(BEAM_SIZE, dtype=jnp.int32)[None, :]
    init_w = jnp.zeros((1, BEAM_SIZE, S_PAD), jnp.float32)

    all_tokens = jnp.concatenate([init_tok, toks], axis=0)
    all_scores = jnp.concatenate([init_score, scores], axis=0)
    all_prev = jnp.concatenate([init_prev, prevs], axis=0)
    all_weights = jnp.concatenate([init_w, weights], axis=0)
    return all_tokens, all_scores, all_weights, all_prev


# ------------------------------ BeamDecode ------------------------------------
def beam_decode(all_tokens, all_scores, all_weights, all_prev, target_length):
    """Backtrack the nbest hypotheses with length penalty.
    Returns List[(tokens, score, per_step_scores, attn_weights, prev_indices)]."""
    toks_np = np.asarray(all_tokens)
    scores_np = np.asarray(all_scores)
    weights_np = np.asarray(all_weights)
    prev_np = np.asarray(all_prev)

    T = target_length
    final_scores = scores_np[T]                                   # (beam,)
    norm = final_scores / (float(T) ** LENGTH_PENALTY)
    order = np.argsort(-norm)

    hypos = []
    for b in order[:NBEST]:
        toks, cum_scores, weights, prev_path = [], [], [], []
        cur = int(b)
        for t in range(T, 0, -1):
            toks.append(int(toks_np[t, cur]))
            cum_scores.append(float(scores_np[t, cur]))
            weights.append(weights_np[t, cur])
            prev_path.append(cur)
            cur = int(prev_np[t, cur])
        toks.reverse(); cum_scores.reverse(); weights.reverse(); prev_path.reverse()
        per_step = [cum_scores[0]] + [cum_scores[i] - cum_scores[i - 1]
                                      for i in range(1, len(cum_scores))]
        if STOP_AT_EOS and EOS_TOKEN in toks:
            cut = toks.index(EOS_TOKEN) + 1
            toks, per_step, weights, prev_path = (
                toks[:cut], per_step[:cut], weights[:cut], prev_path[:cut])
        hypos.append((
            jnp.asarray(toks, jnp.int32),
            float(norm[b]),
            per_step,
            jnp.asarray(np.stack(weights), jnp.float32),
            jnp.asarray(prev_path, jnp.int32),
        ))
    return hypos


# --------------------- ScriptedSequenceGenerator.forward ----------------------
def scripted_sequence_generator_forward(src_tokens, dict_feat, src_lengths, params):
    # TODO(synk): dict_feat (dictionary feature) path of the underlying pytext
    # model is not modeled by the synthetic seq2seq weights.
    src_len = int(np.asarray(src_lengths).reshape(-1)[0])
    target_length = get_target_length(
        src_len, TARGETLEN_CAP, TARGETLEN_A, TARGETLEN_B, TARGETLEN_C)
    all_tokens, all_scores, all_weights, all_prev = beam_search(
        src_tokens, src_len, target_length, params)
    jax.block_until_ready((all_tokens, all_scores, all_weights, all_prev))
    return beam_decode(all_tokens, all_scores, all_weights, all_prev,
                       target_length)


# ----------------------------------- main --------------------------------------
if __name__ == "__main__":
    key = jax.random.PRNGKey(0)
    pkey, tkey = jax.random.split(key)
    params = init_params(pkey)

    src_len = 6
    src_tokens = jax.random.randint(tkey, (src_len,), 3, VOCAB, dtype=jnp.int32)
    src_lengths = jnp.array([src_len], jnp.int32)

    hypos = scripted_sequence_generator_forward(src_tokens, None, src_lengths, params)

    for toks, score, per_step, weights, prev_path in hypos:
        jax.block_until_ready(toks)
        jax.block_until_ready(weights)
        assert np.isfinite(score)
        assert len(per_step) == int(toks.shape[0])
        assert np.all(np.isfinite(np.asarray(weights)))

    print("KERNEL_OK")
</pallas_src>

<mosaic_0001>
module attributes {stable_mosaic.version = 11 : i64} {
  func.func @fused_decoder_kernel(%arg0: memref<16x128xf32, #tpu.memory_space<vmem>>, %arg1: memref<1x16xf32, #tpu.memory_space<vmem>>, %arg2: memref<128x128xf32, #tpu.memory_space<vmem>>, %arg3: memref<128x128xf32, #tpu.memory_space<vmem>>, %arg4: memref<1x128xf32, #tpu.memory_space<vmem>>, %arg5: memref<128x128xf32, #tpu.memory_space<vmem>>, %arg6: memref<128x128xf32, #tpu.memory_space<vmem>>, %arg7: memref<1x128xf32, #tpu.memory_space<vmem>>, %arg8: memref<128x128xf32, #tpu.memory_space<vmem>>, %arg9: memref<1x128xf32, #tpu.memory_space<vmem>>, %arg10: memref<14x8x1xf32, #tpu.memory_space<vmem>>, %arg11: memref<14x8x1xf32, #tpu.memory_space<vmem>>, %arg12: memref<14x8x1xf32, #tpu.memory_space<vmem>>, %arg13: memref<14x8x16xf32, #tpu.memory_space<vmem>>, %arg14: memref<16x128xf32, #tpu.memory_space<vmem>>, %arg15: memref<128x16xf32, #tpu.memory_space<vmem>>) attributes {dimension_semantics = [], scalar_prefetch = 0 : i64, scratch_operands = 2 : i64, tpu.core_type = #tpu.core_type<tc>} {
    %c0 = arith.constant 0 : index
    %c0_0 = arith.constant 0 : index
    %0 = vector.load %arg0[%c0, %c0_0] : memref<16x128xf32, #tpu.memory_space<vmem>>, vector<16x128xf32>
    %c0_1 = arith.constant 0 : index
    %c0_2 = arith.constant 0 : index
    %1 = vector.load %arg3[%c0_1, %c0_2] : memref<128x128xf32, #tpu.memory_space<vmem>>, vector<128x128xf32>
    %cst = arith.constant dense<0.000000e+00> : vector<16x128xf32>
    %2 = tpu.matmul %0, %1, %cst {dimension_numbers = #tpu.dot_dimension_numbers<[1], [0], [0], [1], [0, 0, 1, 1], [], []>} : vector<16x128xf32>, vector<128x128xf32>, vector<16x128xf32> -> vector<16x128xf32>
    %c0_3 = arith.constant 0 : index
    %c0_4 = arith.constant 0 : index
    %3 = vector.load %arg4[%c0_3, %c0_4] : memref<1x128xf32, #tpu.memory_space<vmem>>, vector<1x128xf32>
    %4 = vector.broadcast %3 : vector<1x128xf32> to vector<16x128xf32>
    %5 = arith.addf %2, %4 : vector<16x128xf32>
    %6 = math.tanh %5 : vector<16x128xf32>
    %c0_5 = arith.constant 0 : index
    %c0_6 = arith.constant 0 : index
    %7 = vector.load %arg14[%c0_5, %c0_6] : memref<16x128xf32, #tpu.memory_space<vmem>>, vector<16x128xf32>
    tpu.vector_store %arg14[%c0_5, %c0_6], %6 {strides = array<i32>} : memref<16x128xf32, #tpu.memory_space<vmem>>, vector<16x128xf32>,
    %8 = tpu.transpose %6, [1, 0] : vector<16x128xf32> -> vector<128x16xf32>
    %c0_7 = arith.constant 0 : index
    %c0_8 = arith.constant 0 : index
    %9 = vector.load %arg15[%c0_7, %c0_8] : memref<128x16xf32, #tpu.memory_space<vmem>>, vector<128x16xf32>
    tpu.vector_store %arg15[%c0_7, %c0_8], %8 {strides = array<i32>} : memref<128x16xf32, #tpu.memory_space<vmem>>, vector<128x16xf32>,
    %c0_9 = arith.constant 0 : index
    %c0_10 = arith.constant 0 : index
    %10 = vector.load %arg1[%c0_9, %c0_10] : memref<1x16xf32, #tpu.memory_space<vmem>>, vector<1x16xf32>
    %11 = tpu.iota {dimensions = array<i32: 0>} : vector<8x1xi32>
    %12 = arith.sitofp %11 : vector<8x1xi32> to vector<8x1xf32>
    %13 = tpu.iota {dimensions = array<i32: 1>} : vector<8x128xi32>
    %14 = arith.sitofp %13 : vector<8x128xi32> to vector<8x128xf32>
    %cst_11 = arith.constant 1.000000e+00 : f32
    %15 = vector.broadcast %cst_11 : f32 to vector<8x1xf32>
    %16 = arith.cmpf olt, %12, %15 : vector<8x1xf32>
    %cst_12 = arith.constant 2.000000e+00 : f32
    %17 = vector.broadcast %cst_12 : f32 to vector<8x1xf32>
    %18 = arith.cmpf olt, %12, %17 : vector<8x1xf32>
    %cst_13 = arith.constant 1.280000e+02 : f32
    %19 = vector.broadcast %cst_13 : f32 to vector<8x1xf32>
    %20 = arith.mulf %12, %19 : vector<8x1xf32>
    %21 = vector.broadcast %20 : vector<8x1xf32> to vector<8x128xf32>
    %22 = arith.addf %21, %14 : vector<8x128xf32>
    %23 = vector.extract_strided_slice %22 {offsets = [0, 0], sizes = [1, 128], strides = [1, 1]} : vector<8x128xf32> to vector<1x128xf32>
    %24 = vector.extract_strided_slice %22 {offsets = [1, 0], sizes = [1, 128], strides = [1, 1]} : vector<8x128xf32> to vector<1x128xf32>
    %cst_14 = arith.constant 0.000000e+00 : f32
    %25 = vector.broadcast %cst_14 : f32 to vector<8x128xf32>
    %cst_15 = arith.constant 0.000000e+00 : f32
    %26 = vector.broadcast %cst_15 : f32 to vector<8x1xf32>
    %cst_16 = arith.constant 2.000000e+00 : f32
    %27 = vector.broadcast %cst_16 : f32 to vector<8x1xf32>
    %c0_i32 = arith.constant 0 : i32
    %c14_i32 = arith.constant 14 : i32
    %28 = arith.addi %c0_i32, %c14_i32 : i32
    %c1_i32 = arith.constant 1 : i32
    %29:3 = scf.for %arg16 = %c0_i32 to %28 step %c1_i32 iter_args(%arg17 = %25, %arg18 = %26, %arg19 = %27) -> (vector<8x128xf32>, vector<8x1xf32>, vector<8x1xf32>)  : i32 {
      %30 = vector.broadcast %arg19 : vector<8x1xf32> to vector<8x128xf32>
      %31 = arith.cmpf oeq, %14, %30 : vector<8x128xf32>
      %32 = vector.broadcast %18 : vector<8x1xi1> to vector<8x128xi1>
      %33 = arith.andi %31, %32 : vector<8x128xi1>
      %cst_18 = arith.constant 1.000000e+00 : f32
      %cst_19 = arith.constant 0.000000e+00 : f32
      %34 = vector.broadcast %cst_18 : f32 to vector<8x128xf32>
      %35 = vector.broadcast %cst_19 : f32 to vector<8x128xf32>
      %36 = arith.select %33, %34, %35 : vector<8x128xi1>, vector<8x128xf32>
      %c0_20 = arith.constant 0 : index
      %c0_21 = arith.constant 0 : index
      %37 = vector.load %arg2[%c0_20, %c0_21] : memref<128x128xf32, #tpu.memory_space<vmem>>, vector<128x128xf32>
      %cst_22 = arith.constant dense<0.000000e+00> : vector<8x128xf32>
      %38 = tpu.matmul %36, %37, %cst_22 {dimension_numbers = #tpu.dot_dimension_numbers<[1], [0], [0], [1], [0, 0, 1, 1], [], []>} : vector<8x128xf32>, vector<128x128xf32>, vector<8x128xf32> -> vector<8x128xf32>
      %c0_23 = arith.constant 0 : index
      %c0_24 = arith.constant 0 : index
      %39 = vector.load %arg5[%c0_23, %c0_24] : memref<128x128xf32, #tpu.memory_space<vmem>>, vector<128x128xf32>
      %cst_25 = arith.constant dense<0.000000e+00> : vector<8x128xf32>
      %40 = tpu.matmul %38, %39, %cst_25 {dimension_numbers = #tpu.dot_dimension_numbers<[1], [0], [0], [1], [0, 0, 1, 1], [], []>} : vector<8x128xf32>, vector<128x128xf32>, vector<8x128xf32> -> vector<8x128xf32>
      %c0_26 = arith.constant 0 : index
      %c0_27 = arith.constant 0 : index
      %41 = vector.load %arg6[%c0_26, %c0_27] : memref<128x128xf32, #tpu.memory_space<vmem>>, vector<128x128xf32>
      %cst_28 = arith.constant dense<0.000000e+00> : vector<8x128xf32>
      %42 = tpu.matmul %arg17, %41, %cst_28 {dimension_numbers = #tpu.dot_dimension_numbers<[1], [0], [0], [1], [0, 0, 1, 1], [], []>} : vector<8x128xf32>, vector<128x128xf32>, vector<8x128xf32> -> vector<8x128xf32>
      %43 = arith.addf %40, %42 : vector<8x128xf32>
      %c0_29 = arith.constant 0 : index
      %c0_30 = arith.constant 0 : index
      %44 = vector.load %arg7[%c0_29, %c0_30] : memref<1x128xf32, #tpu.memory_space<vmem>>, vector<1x128xf32>
      %45 = vector.broadcast %44 : vector<1x128xf32> to vector<8x128xf32>
      %46 = arith.addf %43, %45 : vector<8x128xf32>
      %47 = math.tanh %46 : vector<8x128xf32>
      %c0_31 = arith.constant 0 : index
      %c0_32 = arith.constant 0 : index
      %48 = vector.load %arg15[%c0_31, %c0_32] : memref<128x16xf32, #tpu.memory_space<vmem>>, vector<128x16xf32>
      %cst_33 = arith.constant dense<0.000000e+00> : vector<8x16xf32>
      %49 = tpu.matmul %47, %48, %cst_33 {dimension_numbers = #tpu.dot_dimension_numbers<[1], [0], [0], [1], [0, 0, 1, 1], [], []>} : vector<8x128xf32>, vector<128x16xf32>, vector<8x16xf32> -> vector<8x16xf32>
      %50 = vector.broadcast %10 : vector<1x16xf32> to vector<8x16xf32>
      %51 = arith.addf %49, %50 : vector<8x16xf32>
      %cst_34 = arith.constant dense<0xFF800000> : vector<8xf32>
      %52 = vector.multi_reduction <maximumf>, %51, %cst_34 [1] : vector<8x16xf32> to vector<8xf32>
      %53 = vector.shape_cast %52 : vector<8xf32> to vector<8x1xf32>
      %54 = vector.broadcast %53 : vector<8x1xf32> to vector<8x16xf32>
      %55 = arith.subf %51, %54 : vector<8x16xf32>
      %56 = math.exp %55 : vector<8x16xf32>
      %cst_35 = arith.constant dense<0.000000e+00> : vector<8xf32>
      %57 = vector.multi_reduction <add>, %56, %cst_35 [1] : vector<8x16xf32> to vector<8xf32>
      %58 = vector.shape_cast %57 : vector<8xf32> to vector<8x1xf32>
      %59 = vector.broadcast %58 : vector<8x1xf32> to vector<8x16xf32>
      %60 = arith.divf %56, %59 : vector<8x16xf32>
      %c0_36 = arith.constant 0 : index
      %c0_37 = arith.constant 0 : index
      %61 = vector.load %arg14[%c0_36, %c0_37] : memref<16x128xf32, #tpu.memory_space<vmem>>, vector<16x128xf32>
      %cst_38 = arith.constant dense<0.000000e+00> : vector<8x128xf32>
      %62 = tpu.matmul %60, %61, %cst_38 {dimension_numbers = #tpu.dot_dimension_numbers<[1], [0], [0], [1], [0, 0, 1, 1], [], []>} : vector<8x16xf32>, vector<16x128xf32>, vector<8x128xf32> -> vector<8x128xf32>
      %63 = arith.addf %47, %62 : vector<8x128xf32>
      %c0_39 = arith.constant 0 : index
      %c0_40 = arith.constant 0 : index
      %64 = vector.load %arg8[%c0_39, %c0_40] : memref<128x128xf32, #tpu.memory_space<vmem>>, vector<128x128xf32>
      %cst_41 = arith.constant dense<0.000000e+00> : vector<8x128xf32>
      %65 = tpu.matmul %63, %64, %cst_41 {dimension_numbers = #tpu.dot_dimension_numbers<[1], [0], [0], [1], [0, 0, 1, 1], [], []>} : vector<8x128xf32>, vector<128x128xf32>, vector<8x128xf32> -> vector<8x128xf32>
      %c0_42 = arith.constant 0 : index
      %c0_43 = arith.constant 0 : index
      %66 = vector.load %arg9[%c0_42, %c0_43] : memref<1x128xf32, #tpu.memory_space<vmem>>, vector<1x128xf32>
      %67 = vector.broadcast %66 : vector<1x128xf32> to vector<8x128xf32>
      %68 = arith.addf %65, %67 : vector<8x128xf32>
      %cst_44 = arith.constant dense<0xFF800000> : vector<8xf32>
      %69 = vector.multi_reduction <maximumf>, %68, %cst_44 [1] : vector<8x128xf32> to vector<8xf32>
      %70 = vector.shape_cast %69 : vector<8xf32> to vector<8x1xf32>
      %71 = vector.broadcast %70 : vector<8x1xf32> to vector<8x128xf32>
      %72 = arith.subf %68, %71 : vector<8x128xf32>
      %73 = math.exp %72 : vector<8x128xf32>
      %cst_45 = arith.constant dense<0.000000e+00> : vector<8xf32>
      %74 = vector.multi_reduction <add>, %73, %cst_45 [1] : vector<8x128xf32> to vector<8xf32>
      %75 = vector.shape_cast %74 : vector<8xf32> to vector<8x1xf32>
      %76 = math.log %75 : vector<8x1xf32>
      %77 = arith.subf %arg18, %70 : vector<8x1xf32>
      %78 = arith.subf %77, %76 : vector<8x1xf32>
      %79 = vector.broadcast %78 : vector<8x1xf32> to vector<8x128xf32>
      %80 = arith.addf %68, %79 : vector<8x128xf32>
      %c0_i32_46 = arith.constant 0 : i32
      %81 = arith.cmpi eq, %arg16, %c0_i32_46 : i32
      %cst_47 = arith.constant 1.000000e+00 : f32
      %cst_48 = arith.constant 2.000000e+00 : f32
      %82 = arith.select %81, %cst_47, %cst_48 : f32
      %83 = vector.broadcast %82 : f32 to vector<8x1xf32>
      %84 = arith.cmpf olt, %12, %83 : vector<8x1xf32>
      %cst_49 = arith.constant -1.000000e+30 : f32
      %85 = vector.shape_cast %84 : vector<8x1xi1> to vector<8x1xi1>
      %86 = vector.broadcast %85 : vector<8x1xi1> to vector<8x128xi1>
      %87 = vector.broadcast %cst_49 : f32 to vector<8x128xf32>
      %88 = arith.select %86, %80, %87 : vector<8x128xi1>, vector<8x128xf32>
      %89 = vector.extract_strided_slice %88 {offsets = [0, 0], sizes = [1, 128], strides = [1, 1]} : vector<8x128xf32> to vector<1x128xf32>
      %90 = vector.extract_strided_slice %88 {offsets = [1, 0], sizes = [1, 128], strides = [1, 1]} : vector<8x128xf32> to vector<1x128xf32>
      %91 = arith.maximumf %89, %90 : vector<1x128xf32>
      %92 = arith.cmpf oge, %89, %90 : vector<1x128xf32>
      %93 = arith.select %92, %23, %24 : vector<1x128xi1>, vector<1x128xf32>
      %cst_50 = arith.constant dense<0xFF800000> : vector<1xf32>
      %94 = vector.multi_reduction <maximumf>, %91, %cst_50 [1] : vector<1x128xf32> to vector<1xf32>
      %95 = vector.shape_cast %94 : vector<1xf32> to vector<1x1xf32>
      %96 = vector.broadcast %95 : vector<1x1xf32> to vector<1x128xf32>
      %97 = arith.cmpf oeq, %91, %96 : vector<1x128xf32>
      %cst_51 = arith.constant 1.000000e+09 : f32
      %98 = vector.broadcast %cst_51 : f32 to vector<1x128xf32>
      %99 = arith.select %97, %93, %98 : vector<1x128xi1>, vector<1x128xf32>
      %cst_52 = arith.constant dense<0x7F800000> : vector<1xf32>
      %100 = vector.multi_reduction <minimumf>, %99, %cst_52 [1] : vector<1x128xf32> to vector<1xf32>
      %101 = vector.shape_cast %100 : vector<1xf32> to vector<1x1xf32>
      %102 = vector.broadcast %101 : vector<1x1xf32> to vector<1x128xf32>
      %103 = arith.cmpf oeq, %23, %102 : vector<1x128xf32>
      %cst_53 = arith.constant -1.000000e+30 : f32
      %104 = vector.broadcast %cst_53 : f32 to vector<1x128xf32>
      %105 = arith.select %103, %104, %89 : vector<1x128xi1>, vector<1x128xf32>
      %106 = vector.broadcast %101 : vector<1x1xf32> to vector<1x128xf32>
      %107 = arith.cmpf oeq, %24, %106 : vector<1x128xf32>
      %cst_54 = arith.constant -1.000000e+30 : f32
      %108 = vector.broadcast %cst_54 : f32 to vector<1x128xf32>
      %109 = arith.select %107, %108, %90 : vector<1x128xi1>, vector<1x128xf32>
      %110 = arith.maximumf %105, %109 : vector<1x128xf32>
      %111 = arith.cmpf oge, %105, %109 : vector<1x128xf32>
      %112 = arith.select %111, %23, %24 : vector<1x128xi1>, vector<1x128xf32>
      %cst_55 = arith.constant dense<0xFF800000> : vector<1xf32>
      %113 = vector.multi_reduction <maximumf>, %110, %cst_55 [1] : vector<1x128xf32> to vector<1xf32>
      %114 = vector.shape_cast %113 : vector<1xf32> to vector<1x1xf32>
      %115 = vector.broadcast %114 : vector<1x1xf32> to vector<1x128xf32>
      %116 = arith.cmpf oeq, %110, %115 : vector<1x128xf32>
      %cst_56 = arith.constant 1.000000e+09 : f32
      %117 = vector.broadcast %cst_56 : f32 to vector<1x128xf32>
      %118 = arith.select %116, %112, %117 : vector<1x128xi1>, vector<1x128xf32>
      %cst_57 = arith.constant dense<0x7F800000> : vector<1xf32>
      %119 = vector.multi_reduction <minimumf>, %118, %cst_57 [1] : vector<1x128xf32> to vector<1xf32>
      %120 = vector.shape_cast %119 : vector<1xf32> to vector<1x1xf32>
      %cst_58 = arith.constant 1.280000e+02 : f32
      %121 = vector.broadcast %cst_58 : f32 to vector<1x1xf32>
      %122 = arith.divf %101, %121 : vector<1x1xf32>
      %123 = math.floor %122 : vector<1x1xf32>
      %cst_59 = arith.constant 1.280000e+02 : f32
      %124 = vector.broadcast %cst_59 : f32 to vector<1x1xf32>
      %125 = arith.mulf %123, %124 : vector<1x1xf32>
      %126 = arith.subf %101, %125 : vector<1x1xf32>
      %cst_60 = arith.constant 1.280000e+02 : f32
      %127 = vector.broadcast %cst_60 : f32 to vector<1x1xf32>
      %128 = arith.divf %120, %127 : vector<1x1xf32>
      %129 = math.floor %128 : vector<1x1xf32>
      %cst_61 = arith.constant 1.280000e+02 : f32
      %130 = vector.broadcast %cst_61 : f32 to vector<1x1xf32>
      %131 = arith.mulf %129, %130 : vector<1x1xf32>
      %132 = arith.subf %120, %131 : vector<1x1xf32>
      %133 = vector.shape_cast %95 : vector<1x1xf32> to vector<1x1xf32>
      %134 = vector.broadcast %133 : vector<1x1xf32> to vector<8x1xf32>
      %135 = vector.shape_cast %114 : vector<1x1xf32> to vector<1x1xf32>
      %136 = vector.broadcast %135 : vector<1x1xf32> to vector<8x1xf32>
      %137 = arith.select %16, %134, %136 : vector<8x1xi1>, vector<8x1xf32>
      %138 = vector.shape_cast %126 : vector<1x1xf32> to vector<1x1xf32>
      %139 = vector.broadcast %138 : vector<1x1xf32> to vector<8x1xf32>
      %140 = vector.shape_cast %132 : vector<1x1xf32> to vector<1x1xf32>
      %141 = vector.broadcast %140 : vector<1x1xf32> to vector<8x1xf32>
      %142 = arith.select %16, %139, %141 : vector<8x1xi1>, vector<8x1xf32>
      %143 = vector.shape_cast %123 : vector<1x1xf32> to vector<1x1xf32>
      %144 = vector.broadcast %143 : vector<1x1xf32> to vector<8x1xf32>
      %145 = vector.shape_cast %129 : vector<1x1xf32> to vector<1x1xf32>
      %146 = vector.broadcast %145 : vector<1x1xf32> to vector<8x1xf32>
      %147 = arith.select %16, %144, %146 : vector<8x1xi1>, vector<8x1xf32>
      %cst_62 = arith.constant 5.000000e-01 : f32
      %148 = vector.broadcast %cst_62 : f32 to vector<8x1xf32>
      %149 = arith.cmpf olt, %147, %148 : vector<8x1xf32>
      %150 = vector.extract_strided_slice %47 {offsets = [0, 0], sizes = [1, 128], strides = [1, 1]} : vector<8x128xf32> to vector<1x128xf32>
      %151 = vector.extract_strided_slice %47 {offsets = [1, 0], sizes = [1, 128], strides = [1, 1]} : vector<8x128xf32> to vector<1x128xf32>
      %152 = vector.shape_cast %149 : vector<8x1xi1> to vector<8x1xi1>
      %153 = vector.broadcast %152 : vector<8x1xi1> to vector<8x128xi1>
      %154 = vector.shape_cast %150 : vector<1x128xf32> to vector<1x128xf32>
      %155 = vector.broadcast %154 : vector<1x128xf32> to vector<8x128xf32>
      %156 = vector.shape_cast %151 : vector<1x128xf32> to vector<1x128xf32>
      %157 = vector.broadcast %156 : vector<1x128xf32> to vector<8x128xf32>
      %158 = arith.select %153, %155, %157 : vector<8x128xi1>, vector<8x128xf32>
      %159 = vector.extract_strided_slice %60 {offsets = [0, 0], sizes = [1, 16], strides = [1, 1]} : vector<8x16xf32> to vector<1x16xf32>
      %160 = vector.extract_strided_slice %60 {offsets = [1, 0], sizes = [1, 16], strides = [1, 1]} : vector<8x16xf32> to vector<1x16xf32>
      %161 = vector.shape_cast %149 : vector<8x1xi1> to vector<8x1xi1>
      %162 = vector.broadcast %161 : vector<8x1xi1> to vector<8x16xi1>
      %163 = vector.shape_cast %159 : vector<1x16xf32> to vector<1x16xf32>
      %164 = vector.broadcast %163 : vector<1x16xf32> to vector<8x16xf32>
      %165 = vector.shape_cast %160 : vector<1x16xf32> to vector<1x16xf32>
      %166 = vector.broadcast %165 : vector<1x16xf32> to vector<8x16xf32>
      %167 = arith.select %162, %164, %166 : vector<8x16xi1>, vector<8x16xf32>
      %168 = vector.shape_cast %142 : vector<8x1xf32> to vector<1x8x1xf32>
      %169 = arith.index_cast %arg16 : i32 to index
      %c0_63 = arith.constant 0 : index
      %c0_64 = arith.constant 0 : index
      %170 = vector.load %arg10[%169, %c0_63, %c0_64] : memref<14x8x1xf32, #tpu.memory_space<vmem>>, vector<1x8x1xf32>
      tpu.vector_store %arg10[%169, %c0_63, %c0_64], %168 {strides = array<i32>} : memref<14x8x1xf32, #tpu.memory_space<vmem>>, vector<1x8x1xf32>,
      %171 = vector.shape_cast %137 : vector<8x1xf32> to vector<1x8x1xf32>
      %172 = arith.index_cast %arg16 : i32 to index
      %c0_65 = arith.constant 0 : index
      %c0_66 = arith.constant 0 : index
      %173 = vector.load %arg11[%172, %c0_65, %c0_66] : memref<14x8x1xf32, #tpu.memory_space<vmem>>, vector<1x8x1xf32>
      tpu.vector_store %arg11[%172, %c0_65, %c0_66], %171 {strides = array<i32>} : memref<14x8x1xf32, #tpu.memory_space<vmem>>, vector<1x8x1xf32>,
      %174 = vector.shape_cast %147 : vector<8x1xf32> to vector<1x8x1xf32>
      %175 = arith.index_cast %arg16 : i32 to index
      %c0_67 = arith.constant 0 : index
      %c0_68 = arith.constant 0 : index
      %176 = vector.load %arg12[%175, %c0_67, %c0_68] : memref<14x8x1xf32, #tpu.memory_space<vmem>>, vector<1x8x1xf32>
      tpu.vector_store %arg12[%175, %c0_67, %c0_68], %174 {strides = array<i32>} : memref<14x8x1xf32, #tpu.memory_space<vmem>>, vector<1x8x1xf32>,
      %177 = vector.shape_cast %167 : vector<8x16xf32> to vector<1x8x16xf32>
      %178 = arith.index_cast %arg16 : i32 to index
      %c0_69 = arith.constant 0 : index
      %c0_70 = arith.constant 0 : index
      %179 = vector.load %arg13[%178, %c0_69, %c0_70] : memref<14x8x16xf32, #tpu.memory_space<vmem>>, vector<1x8x16xf32>
      tpu.vector_store %arg13[%178, %c0_69, %c0_70], %177 {strides = array<i32>} : memref<14x8x16xf32, #tpu.memory_space<vmem>>, vector<1x8x16xf32>,
      scf.yield %158, %137, %142 : vector<8x128xf32>, vector<8x1xf32>, vector<8x1xf32>
    }
    %c14_i32_17 = arith.constant 14 : i32
    return
  }
}

</mosaic_0001>

<bundles_post_ra>
// kernel: beam_search_device.1
= control target key start
LH: loop header
LB: loop body
LE: loop exit
PB: predicated region body
PF: predicated region fallthrough
CT: control target
= control target key end

     0   :  { %19 = vsyncpa [#allocation5], 0  ;;  %s2044_s0 = inlined_call_operand.vmem [shape: f32[16,128], index: 0, kind: input, shape index: {}]   ;;  %s2045_s1 = inlined_call_operand.vmem [shape: f32[1,16], index: 1, kind: input, shape index: {}]   ;;  %s2046_s2 = inlined_call_operand.vmem [shape: f32[128,128], index: 2, kind: input, shape index: {}]   ;;  %s2047_s3 = inlined_call_operand.hbm [shape: f32[128,128], index: 3, kind: input, shape index: {}]   ;;  %s2048_s4 = inlined_call_operand.vmem [shape: f32[1,128], index: 4, kind: input, shape index: {}]   ;;  %s2049_s5 = inlined_call_operand.hbm [shape: f32[128,128], index: 5, kind: input, shape index: {}]   ;;  %s2050_s6 = inlined_call_operand.hbm [shape: f32[128,128], index: 6, kind: input, shape index: {}]   ;;  %s2051_s7 = inlined_call_operand.vmem [shape: f32[1,128], index: 7, kind: input, shape index: {}]   ;;  %s2052_s8 = inlined_call_operand.hbm [shape: f32[128,128], index: 8, kind: input, shape index: {}]   ;;  %s2053_s9 = inlined_call_operand.vmem [shape: f32[1,128], index: 9, kind: input, shape index: {}]   ;;  %s2054_s10 = inlined_call_operand.vmem [shape: f32[14,8,1], index: 10, kind: output, shape index: {0}]   ;;  %s2055_s11 = inlined_call_operand.vmem [shape: f32[14,8,1], index: 11, kind: output, shape index: {1}]   ;;  %s2056_s12 = inlined_call_operand.vmem [shape: f32[14,8,1], index: 12, kind: output, shape index: {2}]   ;;  %s2057_s13 = inlined_call_operand.vmem [shape: f32[14,8,16], index: 13, kind: output, shape index: {3}]  }
   0x1   :  { %20 = vsyncpa [#allocation7], 0 }
   0x2   :  { %21 = vsyncpa [#allocation10], 0  ;;  %s1645_s25 = smov [#allocation6]   ;;  %s1646_s27 = smov [#allocation4]  }
   0x3   :  { %s47_s26 = sshll.u32 %s1645_s25, 4  ;;  %s33_s28 = sshll.u32 %s1646_s27, 4  ;;  %s48_s26 = int_to_ptr.vmem [resolvable:$true] %s47_s26  ;;  %s1725_s28 = int_to_ptr.vmem [resolvable:$true] %s33_s28 }
   0x4   :  { %s1519_s14 = scalar_lea.hbm %s2049_s5, 2048 }
   0x5   :  { %p1520_p0 = scmp.ne.s32.totalorder %s2049_s5, %s1519_s14  ;;  %p1523_p1 = scmp.lt.u32.totalorder %s1519_s14, %s2049_s5 }
   0x7   :  { %p1525_p2 = pnand %p1523_p1, %p1520_p0 }
   0x9   :  { %1528 = shalt.err (!%p1525_p2)
}
   0xa   :  { %s1529_s19 = scalar_lea.vmem %s48_s26, 2048  ;;  %p1534_p4 = scmp.lt.s32.totalorder %s48_s26, %s48_s26 }
   0xb   :  { %p1530_p3 = scmp.ne.s32.totalorder %s48_s26, %s1529_s19  ;;  %p1535_p5 = scmp.lt.s32.totalorder %s1529_s19, %s1529_s19 }
   0xd   :  { %p1536_p6 = por %p1535_p5, %p1534_p4 }
   0xf   :  { %p1537_p7 = pnand %p1536_p6, %p1530_p3 }
  0x11   :  { %1540 = shalt.err (!%p1537_p7)
}
  0x12   :  { %s1647_s20 = smov 128   ;;  %s1648_s21 = smov 8  }
  0x13   :  { %53 = dma.hbm_to_vmem [thread:$0]  %s2049_s5, 2048, %s48_s26, [#allocation7], %s1647_s20, %s1647_s20, %s1648_s21  }
  0x14   :  { %s1541_s27 = scalar_lea.hbm %s2047_s3, 2048 }
  0x15   :  { %p1542_p8 = scmp.ne.s32.totalorder %s2047_s3, %s1541_s27  ;;  %p1545_p9 = scmp.lt.u32.totalorder %s1541_s27, %s2047_s3 }
  0x17   :  { %p1547_p10 = pnand %p1545_p9, %p1542_p8 }
  0x19   :  { %1550 = shalt.err (!%p1547_p10)
}
  0x1a   :  { %s1551_s16 = scalar_lea.vmem %s1725_s28, 2048  ;;  %p1556_p12 = scmp.lt.s32.totalorder %s1725_s28, %s1725_s28 }
  0x1b   :  { %p1552_p11 = scmp.ne.s32.totalorder %s1725_s28, %s1551_s16  ;;  %p1557_p13 = scmp.lt.s32.totalorder %s1551_s16, %s1551_s16 }
  0x1d   :  { %p1558_p0 = por %p1557_p13, %p1556_p12 }
  0x1f   :  { %p1559_p1 = pnand %p1558_p0, %p1552_p11 }
  0x21   :  { %1562 = shalt.err (!%p1559_p1)
}
  0x22   :  { %39 = dma.hbm_to_vmem [thread:$0]  %s2047_s3, 2048, %s1725_s28, [#allocation5], %s1647_s20, %s1647_s20, %s1648_s21  }
  0x23   :  { %s1649_s17 = smov [#allocation8]   ;;  %s1650_s19 = smov [#allocation9]  }
  0x24   :  { %s59_s18 = sshll.u32 %s1649_s17, 4  ;;  %s73_s22 = sshll.u32 %s1650_s19, 4  ;;  %s60_s18 = int_to_ptr.vmem [resolvable:$true] %s59_s18  ;;  %s1762_s22 = int_to_ptr.vmem [resolvable:$true] %s73_s22 }
  0x25   :  { %s1563_s25 = scalar_lea.hbm %s2050_s6, 2048 }
  0x26   :  { %p1564_p2 = scmp.ne.s32.totalorder %s2050_s6, %s1563_s25  ;;  %p1567_p3 = scmp.lt.u32.totalorder %s1563_s25, %s2050_s6 }
  0x28   :  { %p1569_p4 = pnand %p1567_p3, %p1564_p2 }
  0x2a   :  { %1572 = shalt.err (!%p1569_p4)
}
  0x2b   :  { %s1573_s3 = scalar_lea.vmem %s60_s18, 2048  ;;  %p1578_p6 = scmp.lt.s32.totalorder %s60_s18, %s60_s18 }
  0x2c   :  { %p1574_p5 = scmp.ne.s32.totalorder %s60_s18, %s1573_s3  ;;  %p1579_p7 = scmp.lt.s32.totalorder %s1573_s3, %s1573_s3 }
  0x2e   :  { %p1580_p8 = por %p1579_p7, %p1578_p6 }
  0x30   :  { %p1581_p9 = pnand %p1580_p8, %p1574_p5 }
  0x32   :  { %1584 = shalt.err (!%p1581_p9)
}
  0x33   :  { %65 = dma.hbm_to_vmem [thread:$0]  %s2050_s6, 2048, %s60_s18, [#allocation7], %s1647_s20, %s1647_s20, %s1648_s21  }
  0x34   :  { %s1585_s26 = scalar_lea.hbm %s2052_s8, 2048 }
  0x35   :  { %p1586_p10 = scmp.ne.s32.totalorder %s2052_s8, %s1585_s26  ;;  %p1589_p11 = scmp.lt.u32.totalorder %s1585_s26, %s2052_s8 }
  0x37   :  { %p1591_p12 = pnand %p1589_p11, %p1586_p10 }
  0x39   :  { %1594 = shalt.err (!%p1591_p12)
}
  0x3a   :  { %s1595_s25 = scalar_lea.vmem %s1762_s22, 2048  ;;  %p1600_p0 = scmp.lt.s32.totalorder %s1762_s22, %s1762_s22 }
  0x3b   :  { %p1596_p13 = scmp.ne.s32.totalorder %s1762_s22, %s1595_s25  ;;  %p1601_p1 = scmp.lt.s32.totalorder %s1595_s25, %s1595_s25 }
  0x3d   :  { %p1602_p2 = por %p1601_p1, %p1600_p0 }
  0x3f   :  { %p1603_p3 = pnand %p1602_p2, %p1596_p13 }
  0x41   :  { %1606 = shalt.err (!%p1603_p3)
}
  0x42   :  { %79 = dma.hbm_to_vmem [thread:$0]  %s2052_s8, 2048, %s1762_s22, [#allocation10], %s1647_s20, %s1647_s20, %s1648_s21  }
  0x43   :  { %1623 = dma.done.wait [#allocation5], 2048  }
  0x44   :  { %1624 = vsyncadd [#allocation5], 4294965248 }
  0x45   :  { %1625 = dma.done.wait [#allocation7], 4096  }
  0x46   :  { %1626 = vsyncadd [#allocation7], 4294963200 }
  0x47   :  { %1627 = dma.done.wait [#allocation10], 2048  }
  0x48   :  { %1628 = vsyncadd [#allocation10], 4294965248  ;;  %v1802_v0 = vld [vmem:[%s2045_s1] ss:$0 sm:$0xff]  ;;  %v96_v1 = vld [vmem:[#allocation4] sm:$0xff]  ;;  %v248_v34 = vlaneseq  ;;  %vm230_vm2 = vcmask 130048  }
  0x49   :  { %v97_v2 = vld [vmem:[#allocation4 + $0x8] sm:$0xff]  ;;  %v98_v4 = vld [vmem:[#allocation4 + $0x10] sm:$0xff]  ;;  %v99_v5 = vld [vmem:[#allocation4 + $0x18] sm:$0xff]  ;;  %v1844_v57 = vmov 2.0   ;;  %v1846_v58 = vmov 0.0   ;;  %v1848_v59 = vmov 0.0  }
  0x4a   :  { %v1307_v3 = vpack.c.bf16 %v97_v2, %v96_v1  ;;  %v1311_v6 = vpack.c.bf16 %v99_v5, %v98_v4  ;;  %v100_v7 = vld [vmem:[#allocation4 + $0x20] sm:$0xff]  ;;  %v101_v8 = vld [vmem:[#allocation4 + $0x28] sm:$0xff]  ;;  %v94_v10 = vld [vmem:[%s2044_s0] sm:$0xff]  ;;  %v1813_v35 = vshrl.u32 %v248_v34, 7  ;;  %v1818_v37 = vand.u32 127, %v248_v34 }
  0x4b   :  { %v1315_v9 = vpack.c.bf16 %v101_v8, %v100_v7  ;;  %v102_v11 = vld [vmem:[#allocation4 + $0x30] sm:$0xff]  ;;  %v103_v12 = vld [vmem:[#allocation4 + $0x38] sm:$0xff]  ;;  %1122 = vmatprep.mubr.f32.mxu0 %v94_v10  ;;  %v104_v14 = vld [vmem:[#allocation4 + $0x40] sm:$0xff] }
  0x4c   :  { %1308 = vmatprep.subr.bf16.mxu0 %v1307_v3  ;;  %v1319_v13 = vpack.c.bf16 %v103_v12, %v102_v11  ;;  %v105_v15 = vld [vmem:[#allocation4 + $0x48] sm:$0xff]  ;;  %v106_v17 = vld [vmem:[#allocation4 + $0x50] sm:$0xff]  ;;  %v107_v18 = vld [vmem:[#allocation4 + $0x58] sm:$0xff]  ;;  %v1816_v36 = vcvt.s32.f32 %v1813_v35  ;;  %v253_v38 = vcvt.s32.f32 %v1818_v37 }
  0x4d   :  { %1310 = vmatpush3.bf16.msra.mxu0 %v1307_v3  ;;  %v1323_v16 = vpack.c.bf16 %v105_v15, %v104_v14  ;;  %v1327_v19 = vpack.c.bf16 %v107_v18, %v106_v17  ;;  %v108_v20 = vld [vmem:[#allocation4 + $0x60] sm:$0xff]  ;;  %v109_v21 = vld [vmem:[#allocation4 + $0x68] sm:$0xff]  ;;  %v110_v23 = vld [vmem:[#allocation4 + $0x70] sm:$0xff] }
  0x4e   :  { %1312 = vmatprep.subr.bf16.mxu0 %v1311_v6  ;;  %v1331_v22 = vpack.c.bf16 %v109_v21, %v108_v20  ;;  %v111_v24 = vld [vmem:[#allocation4 + $0x78] sm:$0xff]  ;;  %v977_v27 = vld [vmem:[%s2048_s4] ss:$0 sm:$0xff]  ;;  %v256_v39 = vmul.f32 128.0, %v1816_v36  ;;  %vm254_vm0 = vcmp.lt.f32.partialorder %v1816_v36, 1.0  ;;  %vm255_vm1 = vcmp.lt.f32.partialorder %v1816_v36, 2.0 }
  0x4f   :  { %v1335_v25 = vpack.c.bf16 %v111_v24, %v110_v23  ;;  %v95_v26 = vld [vmem:[%s2044_s0 + $0x8] sm:$0xff]  ;;  %s1850_s0 = smov 0  }
  0x50   :  { %v1826_v40 = vadd.f32 %v256_v39, %v253_v38 }
  0x51   :  { %1314 = vmatpush3.bf16.msra.mxu0 %v1311_v6 }
  0x52   :  { %1316 = vmatprep.subr.bf16.mxu0 %v1315_v9 }
  0x55   :  { %1318 = vmatpush3.bf16.msra.mxu0 %v1315_v9 }
  0x56   :  { %1320 = vmatprep.subr.bf16.mxu0 %v1319_v13 }
  0x59   :  { %1322 = vmatpush3.bf16.msra.mxu0 %v1319_v13 }
  0x5a   :  { %1324 = vmatprep.subr.bf16.mxu0 %v1323_v16 }
  0x5d   :  { %1326 = vmatpush3.bf16.msra.mxu0 %v1323_v16 }
  0x5e   :  { %1328 = vmatprep.subr.bf16.mxu0 %v1327_v19 }
  0x61   :  { %1330 = vmatpush3.bf16.msra.mxu0 %v1327_v19 }
  0x62   :  { %1332 = vmatprep.subr.bf16.mxu0 %v1331_v22 }
  0x65   :  { %1334 = vmatpush3.bf16.msra.mxu0 %v1331_v22 }
  0x66   :  { %1336 = vmatprep.subr.bf16.mxu0 %v1335_v25 }
  0x69   :  { %1338 = vmatpush3.bf16.msra.mxu0 %v1335_v25 }
  0x6c   :  { %1123 = vmatmul.mubr.f32.vlgmr.msra.gmra.mrb[0].mxu0 %v95_v26 }
 0x13f   :  { %v1124_v28 = vpop.f32.mrb[0].mxu0 }
 0x140   :  { %v191_v29 = vadd.f32 %v1124_v28, %v977_v27  ;;  %v185_v30 = vpop.f32.mrb[1].mxu0 }
 0x141   :  { %v186_v31 = vadd.f32 %v977_v27, %v185_v30 }
 0x142   :  { %1505 = vtanh.f32 %v191_v29 }
 0x143   :  { %1507 = vtanh.f32 %v186_v31 }
 0x14c   :  { %v1506_v32 = vpop.eup %1505 }
 0x14d   :  { %v1508_v33 = vpop.eup %1507  ;;  %197 = vst [vmem:[#allocation2 + $0x8] sm:$0xff] %v1506_v32 }
 0x14e   :  { %196 = vst [vmem:[#allocation2] sm:$0xff] %v1508_v33  ;;  %198 = vxpose.xlu0.b32.start [1/2] (short) %v1508_v33, 128 }
 0x152   :  { %199 = vxpose.xlu0.b32.end [2/2] (short) %v1506_v32, 128 }
 0x1ce   :  { %v214_v41 = vpop.trf.xlu0 }
 0x1cf   :  { %231 = vst.msk [vmem:[#allocation3] sm:$0xff] %vm230_vm2, %v214_v41 }
 0x1d2   :  { %v215_v42 = vpop.trf.xlu0 }
 0x1d3   :  { %232 = vst.msk [vmem:[#allocation3 + $0x8] sm:$0xff] %vm230_vm2, %v215_v42 }
 0x1d6   :  { %v216_v43 = vpop.trf.xlu0 }
 0x1d7   :  { %233 = vst.msk [vmem:[#allocation3 + $0x10] sm:$0xff] %vm230_vm2, %v216_v43 }
 0x1da   :  { %v217_v44 = vpop.trf.xlu0 }
 0x1db   :  { %234 = vst.msk [vmem:[#allocation3 + $0x18] sm:$0xff] %vm230_vm2, %v217_v44 }
 0x1de   :  { %v218_v45 = vpop.trf.xlu0 }
 0x1df   :  { %235 = vst.msk [vmem:[#allocation3 + $0x20] sm:$0xff] %vm230_vm2, %v218_v45 }
 0x1e2   :  { %v219_v46 = vpop.trf.xlu0 }
 0x1e3   :  { %236 = vst.msk [vmem:[#allocation3 + $0x28] sm:$0xff] %vm230_vm2, %v219_v46 }
 0x1e6   :  { %v220_v47 = vpop.trf.xlu0 }
 0x1e7   :  { %237 = vst.msk [vmem:[#allocation3 + $0x30] sm:$0xff] %vm230_vm2, %v220_v47 }
 0x1ea   :  { %v221_v48 = vpop.trf.xlu0 }
 0x1eb   :  { %238 = vst.msk [vmem:[#allocation3 + $0x38] sm:$0xff] %vm230_vm2, %v221_v48 }
 0x1ee   :  { %v222_v49 = vpop.trf.xlu0 }
 0x1ef   :  { %239 = vst.msk [vmem:[#allocation3 + $0x40] sm:$0xff] %vm230_vm2, %v222_v49 }
 0x1f2   :  { %v223_v50 = vpop.trf.xlu0 }
 0x1f3   :  { %240 = vst.msk [vmem:[#allocation3 + $0x48] sm:$0xff] %vm230_vm2, %v223_v50 }
 0x1f6   :  { %v224_v51 = vpop.trf.xlu0 }
 0x1f7   :  { %241 = vst.msk [vmem:[#allocation3 + $0x50] sm:$0xff] %vm230_vm2, %v224_v51 }
 0x1fa   :  { %v225_v52 = vpop.trf.xlu0 }
 0x1fb   :  { %242 = vst.msk [vmem:[#allocation3 + $0x58] sm:$0xff] %vm230_vm2, %v225_v52 }
 0x1fe   :  { %v226_v53 = vpop.trf.xlu0 }
 0x1ff   :  { %243 = vst.msk [vmem:[#allocation3 + $0x60] sm:$0xff] %vm230_vm2, %v226_v53 }
 0x202   :  { %v227_v54 = vpop.trf.xlu0 }
 0x203   :  { %244 = vst.msk [vmem:[#allocation3 + $0x68] sm:$0xff] %vm230_vm2, %v227_v54 }
 0x206   :  { %v228_v55 = vpop.trf.xlu0 }
 0x207   :  { %245 = vst.msk [vmem:[#allocation3 + $0x70] sm:$0xff] %vm230_vm2, %v228_v55 }
 0x20a   :  { %v229_v56 = vpop.trf.xlu0 }
 0x20b   :  { %246 = vst.msk [vmem:[#allocation3 + $0x78] sm:$0xff] %vm230_vm2, %v229_v56 }
 0x20c LB: > { %v272_v60 = vld [vmem:[%s2046_s2] sm:$0xff]  ;;  %v273_v61 = vld [vmem:[%s2046_s2 + $0x8] sm:$0xff]  ;;  %v274_v62 = vld [vmem:[%s2046_s2 + $0x10] sm:$0xff]  ;;  %v1651_v63 = vmov 0.0|0.0   ;;  %vm1652_vm3 = vmmov 0   ;;  %v1653_v3 = vmov 0.0   ;;  %vm267_vm4 = vcmp.eq.f32.partialorder %v253_v38, %v1631_v57  ;;  %s1643_s0 = sphi %s1850_s0, %s263_s0   ;;  %v1639_v59 = vphi %v1848_v59, %v916_v59   ;;  %v1635_v58 = vphi %v1846_v58, %v886_v58   ;;  %v1631_v57 = vphi %v1844_v57, %v895_v57  }
 0x20d   : > { %1339 = vmatprep.subr.bf16.mxu0 %v1651_v63  ;;  %v1340_v1 = vpack.c.bf16 %v273_v61, %v272_v60  ;;  %v275_v2 = vld [vmem:[%s2046_s2 + $0x18] sm:$0xff]  ;;  %1157 = vmatprep.mubr.msk.f32.mxu0 %vm1652_vm3, %v1653_v3  ;;  %v276_v5 = vld [vmem:[%s2046_s2 + $0x20] sm:$0xff]  ;;  %v277_v6 = vld [vmem:[%s2046_s2 + $0x28] sm:$0xff]  ;;  %v1654_v57 = vmov 1.0   ;;  %p823_p4 = scmp.eq.s32.totalorder %s1643_s0, 0  ;;  %vm839_vm7 = vcmask 1040384  }
 0x20e   : > { %1363 = vmatprep.subr.bf16.mxu1 %v1651_v63  ;;  %1192 = vmatprep.mubr.msk.f32.mxu1 %vm1652_vm3, %v1653_v3  ;;  %v1343_v4 = vpack.c.bf16 %v275_v2, %v274_v62  ;;  %v374_v7 = vld [vmem:[#allocation8] sm:$0xff]  ;;  %v375_v8 = vld [vmem:[#allocation8 + $0x8] sm:$0xff]  ;;  %v1346_v9 = vpack.c.bf16 %v277_v6, %v276_v5  ;;  %v376_v11 = vld [vmem:[#allocation8 + $0x10] sm:$0xff]  ;;  %s2000_s18 = sshll.u32 %s1643_s0, 3  ;;  %vm928_vm13 = vcmask 7168   ;;  %s263_s0 = sadd.s32 1, %s1643_s0  }
 0x20f   : > { %1341 = vmatpush3.bf16.msra.mxu0 %v1340_v1  ;;  %v1364_v10 = vpack.c.bf16 %v375_v8, %v374_v7  ;;  %v377_v12 = vld [vmem:[#allocation8 + $0x18] sm:$0xff]  ;;  %v278_v13 = vld [vmem:[%s2046_s2 + $0x30] sm:$0xff]  ;;  %v279_v14 = vld [vmem:[%s2046_s2 + $0x38] sm:$0xff]  ;;  %s824_s6 = scalar_select %p823_p4, 1.0, 2.0 }
 0x210   : > { %1342 = vmatprep.subr.bf16.mxu0 %v1651_v63  ;;  %v1367_v15 = vpack.c.bf16 %v377_v12, %v376_v11  ;;  %v378_v16 = vld [vmem:[#allocation8 + $0x20] sm:$0xff]  ;;  %v379_v17 = vld [vmem:[#allocation8 + $0x28] sm:$0xff]  ;;  %v1349_v18 = vpack.c.bf16 %v279_v14, %v278_v13  ;;  %v280_v19 = vld [vmem:[%s2046_s2 + $0x40] sm:$0xff]  ;;  %s930_s8 = scalar_lea.vmem %s2055_s11, %s2000_s18  ;;  %s932_s21 = scalar_lea.vmem %s2056_s12, %s2000_s18 }
 0x211   : > { %1365 = vmatpush3.bf16.msra.mxu1 %v1364_v10  ;;  %v281_v20 = vld [vmem:[%s2046_s2 + $0x48] sm:$0xff]  ;;  %v1370_v21 = vpack.c.bf16 %v379_v17, %v378_v16  ;;  %v380_v22 = vld [vmem:[#allocation8 + $0x30] sm:$0xff]  ;;  %v282_v25 = vld [vmem:[%s2046_s2 + $0x50] sm:$0xff]  ;;  %s934_s4 = scalar_lea.vmem %s2057_s13, %s2000_s18  ;;  %s927_s28 = scalar_lea.vmem %s2054_s10, %s2000_s18 }
 0x212   : > { %1366 = vmatprep.subr.bf16.mxu1 %v1651_v63  ;;  %v381_v23 = vld [vmem:[#allocation8 + $0x38] sm:$0xff]  ;;  %v1352_v24 = vpack.c.bf16 %v281_v20, %v280_v19  ;;  %v283_v26 = vld [vmem:[%s2046_s2 + $0x58] sm:$0xff]  ;;  %v382_v28 = vld [vmem:[#allocation8 + $0x40] sm:$0xff]  ;;  %p260_p5 = scmp.ge.s32.totalorder %s263_s0, 14  }
 0x213   : > { %1344 = vmatpush3.bf16.msra.mxu0 %v1343_v4  ;;  %v1373_v27 = vpack.c.bf16 %v381_v23, %v380_v22  ;;  %v383_v29 = vld [vmem:[#allocation8 + $0x48] sm:$0xff]  ;;  %v1355_v30 = vpack.c.bf16 %v283_v26, %v282_v25  ;;  %v284_v31 = vld [vmem:[%s2046_s2 + $0x60] sm:$0xff]  ;;  %v285_v32 = vld [vmem:[%s2046_s2 + $0x68] sm:$0xff] }
 0x214   : > { %1345 = vmatprep.subr.bf16.mxu0 %v1651_v63  ;;  %v1376_v33 = vpack.c.bf16 %v383_v29, %v382_v28  ;;  %v384_v34 = vld [vmem:[#allocation8 + $0x50] sm:$0xff]  ;;  %v385_v39 = vld [vmem:[#allocation8 + $0x58] sm:$0xff]  ;;  %v1358_v41 = vpack.c.bf16 %v285_v32, %v284_v31  ;;  %v286_v42 = vld [vmem:[%s2046_s2 + $0x70] sm:$0xff] }
 0x215   : > { %1368 = vmatpush3.bf16.msra.mxu1 %v1367_v15  ;;  %v287_v43 = vld [vmem:[%s2046_s2 + $0x78] sm:$0xff]  ;;  %v1379_v44 = vpack.c.bf16 %v385_v39, %v384_v34  ;;  %v386_v45 = vld [vmem:[#allocation8 + $0x60] sm:$0xff]  ;;  %v388_v51 = vld [vmem:[#allocation8 + $0x70] sm:$0xff] }
 0x216   : > { %1369 = vmatprep.subr.bf16.mxu1 %v1651_v63  ;;  %v387_v46 = vld [vmem:[#allocation8 + $0x68] sm:$0xff]  ;;  %v1361_v47 = vpack.c.bf16 %v287_v43, %v286_v42  ;;  %v358_v48 = vld [vmem:[#allocation6] sm:$0xff]  ;;  %v389_v52 = vld [vmem:[#allocation8 + $0x78] sm:$0xff] }
 0x217   : > { %1347 = vmatpush3.bf16.msra.mxu0 %v1346_v9  ;;  %v359_v49 = vld [vmem:[#allocation6 + $0x8] sm:$0xff]  ;;  %v1382_v50 = vpack.c.bf16 %v387_v46, %v386_v45  ;;  %vm270_vm5 = vmand %vm267_vm4, %vm255_vm1  ;;  %v360_v54 = vld [vmem:[#allocation6 + $0x10] sm:$0xff]  ;;  %v1385_v56 = vpack.c.bf16 %v389_v52, %v388_v51 }
 0x218   : > { %1348 = vmatprep.subr.bf16.mxu0 %v1651_v63  ;;  %v1388_v53 = vpack.c.bf16 %v359_v49, %v358_v48  ;;  %v361_v55 = vld [vmem:[#allocation6 + $0x18] sm:$0xff]  ;;  %v362_v61 = vld [vmem:[#allocation6 + $0x20] sm:$0xff]  ;;  %v363_v62 = vld [vmem:[#allocation6 + $0x28] sm:$0xff] }
 0x219   : > { %1371 = vmatpush3.bf16.msra.mxu1 %v1370_v21  ;;  %v1391_v60 = vpack.c.bf16 %v361_v55, %v360_v54  ;;  %v1394_v1 = vpack.c.bf16 %v363_v62, %v362_v61  ;;  %v364_v2 = vld [vmem:[#allocation6 + $0x30] sm:$0xff]  ;;  %v365_v4 = vld [vmem:[#allocation6 + $0x38] sm:$0xff]  ;;  %v366_v6 = vld [vmem:[#allocation6 + $0x40] sm:$0xff] }
 0x21a   : > { %1372 = vmatprep.subr.bf16.mxu1 %v1651_v63  ;;  %v1397_v5 = vpack.c.bf16 %v365_v4, %v364_v2  ;;  %v367_v7 = vld [vmem:[#allocation6 + $0x48] sm:$0xff]  ;;  %v368_v9 = vld [vmem:[#allocation6 + $0x50] sm:$0xff]  ;;  %v369_v10 = vld [vmem:[#allocation6 + $0x58] sm:$0xff] }
 0x21b   : > { %1350 = vmatpush3.bf16.msra.mxu0 %v1349_v18  ;;  %v1400_v8 = vpack.c.bf16 %v367_v7, %v366_v6  ;;  %v1403_v11 = vpack.c.bf16 %v369_v10, %v368_v9  ;;  %v370_v12 = vld [vmem:[#allocation6 + $0x60] sm:$0xff]  ;;  %v371_v13 = vld [vmem:[#allocation6 + $0x68] sm:$0xff]  ;;  %v372_v15 = vld [vmem:[#allocation6 + $0x70] sm:$0xff] }
 0x21c   : > { %1351 = vmatprep.subr.bf16.mxu0 %v1651_v63  ;;  %v1406_v14 = vpack.c.bf16 %v371_v13, %v370_v12  ;;  %v373_v16 = vld [vmem:[#allocation6 + $0x78] sm:$0xff]  ;;  %v539_v18 = vld [vmem:[#allocation3] sm:$0xff]  ;;  %v540_v19 = vld [vmem:[#allocation3 + $0x8] sm:$0xff] }
 0x21d   : > { %1374 = vmatpush3.bf16.msra.mxu1 %v1373_v27  ;;  %v1409_v17 = vpack.c.bf16 %v373_v16, %v372_v15  ;;  %v541_v20 = vld [vmem:[#allocation3 + $0x10] sm:$0xff]  ;;  %v1412_v21 = vpack.c.bf16 %v540_v19, %v539_v18  ;;  %v542_v22 = vld [vmem:[#allocation3 + $0x18] sm:$0xff]  ;;  %v544_v25 = vld [vmem:[#allocation3 + $0x28] sm:$0xff] }
 0x21e   : > { %1375 = vmatprep.subr.bf16.mxu1 %v1651_v63  ;;  %v1415_v23 = vpack.c.bf16 %v542_v22, %v541_v20  ;;  %v545_v27 = vld [vmem:[#allocation3 + $0x30] sm:$0xff]  ;;  %v547_v31 = vld [vmem:[#allocation3 + $0x40] sm:$0xff]  ;;  %v548_v32 = vld [vmem:[#allocation3 + $0x48] sm:$0xff] }
 0x21f   : > { %1353 = vmatpush3.bf16.msra.mxu0 %v1352_v24  ;;  %v543_v24 = vld [vmem:[#allocation3 + $0x20] sm:$0xff]  ;;  %v1424_v34 = vpack.c.bf16 %v548_v32, %v547_v31  ;;  %v550_v42 = vld [vmem:[#allocation3 + $0x58] sm:$0xff]  ;;  %v552_v45 = vld [vmem:[#allocation3 + $0x68] sm:$0xff] }
 0x220   : > { %1354 = vmatprep.subr.bf16.mxu0 %v1651_v63  ;;  %v1418_v26 = vpack.c.bf16 %v544_v25, %v543_v24  ;;  %v554_v48 = vld [vmem:[#allocation3 + $0x78] sm:$0xff]  ;;  %v979_v51 = vld [vmem:[%s2051_s7] ss:$0 sm:$0xff]  ;;  %v719_v9 = vld [vmem:[#allocation9 + $0x8] sm:$0xff] }
 0x221   : > { %1377 = vmatpush3.bf16.msra.mxu1 %v1376_v33  ;;  %v642_v6 = vld [vmem:[#allocation2] sm:$0xff]  ;;  %v643_v7 = vld [vmem:[#allocation2 + $0x8] sm:$0xff]  ;;  %v723_v15 = vld [vmem:[#allocation9 + $0x28] sm:$0xff] }
 0x222   : > { %1378 = vmatprep.subr.bf16.mxu1 %v1651_v63  ;;  %v720_v10 = vld [vmem:[#allocation9 + $0x10] sm:$0xff]  ;;  %v721_v12 = vld [vmem:[#allocation9 + $0x18] sm:$0xff]  ;;  %v726_v20 = vld [vmem:[#allocation9 + $0x40] sm:$0xff] }
 0x223   : > { %1356 = vmatpush3.bf16.msra.mxu0 %v1355_v30  ;;  %v1442_v13 = vpack.c.bf16 %v721_v12, %v720_v10  ;;  %v725_v18 = vld [vmem:[#allocation9 + $0x38] sm:$0xff]  ;;  %v732_v31 = vld [vmem:[#allocation9 + $0x70] sm:$0xff]  ;;  %v880_v12 = vsub.s32 0, %v1813_v35 }
 0x224   : > { %1357 = vmatprep.subr.bf16.mxu0 %v1651_v63  ;;  %v729_v24 = vld [vmem:[#allocation9 + $0x58] sm:$0xff] }
 0x225   : > { %1380 = vmatpush3.bf16.msra.mxu1 %v1379_v44  ;;  %v551_v44 = vld [vmem:[#allocation3 + $0x60] sm:$0xff]  ;;  %v733_v32 = vld [vmem:[#allocation9 + $0x78] sm:$0xff] }
 0x226   : > { %1381 = vmatprep.subr.bf16.mxu1 %v1651_v63  ;;  %v1430_v46 = vpack.c.bf16 %v552_v45, %v551_v44 }
 0x227   : > { %1359 = vmatpush3.bf16.msra.mxu0 %v1358_v41  ;;  %v549_v41 = vld [vmem:[#allocation3 + $0x50] sm:$0xff] }
 0x228   : > { %1360 = vmatprep.subr.bf16.mxu0 %v1651_v63  ;;  %v1427_v43 = vpack.c.bf16 %v550_v42, %v549_v41 }
 0x229   : > { %1383 = vmatpush3.bf16.msra.mxu1 %v1382_v50 }
 0x22a   : > { %1384 = vmatprep.subr.bf16.mxu1 %v1651_v63 }
 0x22b   : > { %1362 = vmatpush3.bf16.msra.mxu0 %v1361_v47  ;;  %v553_v47 = vld [vmem:[#allocation3 + $0x70] sm:$0xff] }
 0x22c   : > { %1387 = vmatprep.subr.bf16.mxu0 %v1651_v63  ;;  %v1433_v49 = vpack.c.bf16 %v554_v48, %v553_v47 }
 0x22d   : > { %1386 = vmatpush3.bf16.msra.mxu1 %v1385_v56 }
 0x22e   : > { %1158 = vmatmul.mubr.msk.f32.vlgmr.msra.gmra.mrb[0].mxu0 %vm270_vm5, %v1654_v57  ;;  %1411 = vmatprep.subr.bf16.mxu1 %v1651_v63 }
 0x22f   : > { %1389 = vmatpush3.bf16.msra.mxu0 %v1388_v53  ;;  %1227 = vmatprep.mubr.msk.f32.mxu0 %vm1652_vm3, %v1653_v3 }
 0x230   : > { %1390 = vmatprep.subr.bf16.mxu0 %v1651_v63  ;;  %1193 = vmatmul.mubr.f32.vlgmr.msra.gmra.mrb[0].mxu1 %v1639_v59  ;;  %v546_v59 = vld [vmem:[#allocation3 + $0x38] sm:$0xff] }
 0x231   : > { %1262 = vmatprep.mubr.msk.f32.mxu1 %vm1652_vm3, %v1653_v3  ;;  %1413 = vmatpush3.bf16.msra.mxu1 %v1412_v21  ;;  %v1421_v28 = vpack.c.bf16 %v546_v59, %v545_v27  ;;  %v727_v21 = vld [vmem:[#allocation9 + $0x48] sm:$0xff] }
 0x232   : > { %1414 = vmatprep.subr.bf16.mxu1 %v1651_v63  ;;  %v1451_v22 = vpack.c.bf16 %v727_v21, %v726_v20  ;;  %v731_v27 = vld [vmem:[#allocation9 + $0x68] sm:$0xff] }
 0x233   : > { %1392 = vmatpush3.bf16.msra.mxu0 %v1391_v60 }
 0x234   : > { %1393 = vmatprep.subr.bf16.mxu0 %v1651_v63 }
 0x235   : > { %1416 = vmatpush3.bf16.msra.mxu1 %v1415_v23  ;;  %v728_v23 = vld [vmem:[#allocation9 + $0x50] sm:$0xff] }
 0x236   : > { %1417 = vmatprep.subr.bf16.mxu1 %v1651_v63  ;;  %v1454_v25 = vpack.c.bf16 %v729_v24, %v728_v23  ;;  %v914_v24 = vsub.s32 1, %v1813_v35 }
 0x237   : > { %1395 = vmatpush3.bf16.msra.mxu0 %v1394_v1 }
 0x238   : > { %1396 = vmatprep.subr.bf16.mxu0 %v1651_v63 }
 0x239   : > { %1419 = vmatpush3.bf16.msra.mxu1 %v1418_v26  ;;  %v730_v26 = vld [vmem:[#allocation9 + $0x60] sm:$0xff] }
 0x23a   : > { %1420 = vmatprep.subr.bf16.mxu1 %v1651_v63  ;;  %v1457_v59 = vpack.c.bf16 %v731_v27, %v730_v26 }
 0x23b   : > { %1398 = vmatpush3.bf16.msra.mxu0 %v1397_v5 }
 0x23c   : > { %1399 = vmatprep.subr.bf16.mxu0 %v1651_v63 }
 0x23d   : > { %1422 = vmatpush3.bf16.msra.mxu1 %v1421_v28 }
 0x23e   : > { %1423 = vmatprep.subr.bf16.mxu1 %v1651_v63 }
 0x23f   : > { %1401 = vmatpush3.bf16.msra.mxu0 %v1400_v8  ;;  %v1436_v8 = vpack.c.bf16 %v643_v7, %v642_v6 }
 0x240   : > { %1402 = vmatprep.subr.bf16.mxu0 %v1651_v63 }
 0x241   : > { %1425 = vmatpush3.bf16.msra.mxu1 %v1424_v34 }
 0x242   : > { %1426 = vmatprep.subr.bf16.mxu1 %v1651_v63 }
 0x243   : > { %1404 = vmatpush3.bf16.msra.mxu0 %v1403_v11 }
 0x244   : > { %1405 = vmatprep.subr.bf16.mxu0 %v1651_v63 }
 0x245   : > { %1428 = vmatpush3.bf16.msra.mxu1 %v1427_v43 }
 0x246   : > { %1429 = vmatprep.subr.bf16.mxu1 %v1651_v63 }
 0x247   : > { %1407 = vmatpush3.bf16.msra.mxu0 %v1406_v14  ;;  %v722_v14 = vld [vmem:[#allocation9 + $0x20] sm:$0xff] }
 0x248   : > { %1408 = vmatprep.subr.bf16.mxu0 %v1651_v63  ;;  %v1445_v16 = vpack.c.bf16 %v723_v15, %v722_v14 }
 0x249   : > { %1431 = vmatpush3.bf16.msra.mxu1 %v1430_v46 }
 0x24a   : > { %1432 = vmatprep.subr.bf16.mxu1 %v1651_v63 }
 0x24b   : > { %1410 = vmatpush3.bf16.msra.mxu0 %v1409_v17  ;;  %v724_v17 = vld [vmem:[#allocation9 + $0x30] sm:$0xff] }
 0x24c   : > { %1435 = vmatprep.subr.bf16.mxu0 %v1651_v63  ;;  %v1448_v19 = vpack.c.bf16 %v725_v18, %v724_v17 }
 0x24d   : > { %1434 = vmatpush3.bf16.msra.mxu1 %v1433_v49 }
 0x24e   : > { %1438 = vmatprep.subr.bf16.mxu1 %v1651_v63 }
 0x301   : > { %v354_v29 = vpop.f32.mrb[0].mxu0 }
 0x302   : > { %v1159_v30 = vpop.f32.mrb[1].mxu0  ;;  %1228 = vmatmul.mubr.f32.vlgmr.msra.gmra.mrb[2].mxu0 %v354_v29 }
 0x303   : > { %1269 = vmatprep.mubr.msk.f32.mxu0 %vm1652_vm3, %v1653_v3  ;;  %v456_v33 = vpop.f32.mrb[0].mxu1  ;;  %1437 = vmatpush3.bf16.msra.mxu0 %v1436_v8 }
 0x304   : > { %v1194_v39 = vpop.f32.mrb[1].mxu1 }
 0x3d5   : > { %v526_v50 = vpop.f32.mrb[2].mxu0 }
 0x3d6   : > { %v527_v52 = vadd.f32 %v526_v50, %v456_v33  ;;  %v1229_v53 = vpop.f32.mrb[3].mxu0  ;;  %v1460_v33 = vpack.c.bf16 %v733_v32, %v732_v31 }
 0x3d7   : > { %v825_v53 = vstv %s824_s6 }
 0x3d8   : > { %v537_v54 = vadd.f32 %v979_v51, %v527_v52  ;;  %vm826_vm6 = vcmp.lt.f32.partialorder %v1816_v36, %v825_v53 }
 0x3da   : > { %1509 = vtanh.f32 %v537_v54 }
 0x3e4   : > { %v1965_v55 = vpop.eup %1509 }
 0x3e5   : > { %1263 = vmatmul.mubr.f32.vlgmr.msra.gmra.mrb[2].mxu1 %v1965_v55  ;;  %v915_v31 = vrot.slane %v1965_v55, %v914_v24 }
 0x3e6   : > { %1304 = vmatprep.mubr.msk.f32.mxu1 %vm1652_vm3, %v1653_v3  ;;  %v718_v3 = vld [vmem:[#allocation9] sm:$0xff] }
 0x3e7   : > { %v1439_v11 = vpack.c.bf16 %v719_v9, %v718_v3 }
 0x3e9   : > { %1440 = vmatpush3.bf16.msra.mxu1 %v1439_v11 }
 0x3ea   : > { %1441 = vmatprep.subr.bf16.mxu1 %v1651_v63 }
 0x3ed   : > { %1443 = vmatpush3.bf16.msra.mxu1 %v1442_v13 }
 0x3ee   : > { %1444 = vmatprep.subr.bf16.mxu1 %v1651_v63 }
 0x3f1   : > { %1446 = vmatpush3.bf16.msra.mxu1 %v1445_v16 }
 0x3f2   : > { %1447 = vmatprep.subr.bf16.mxu1 %v1651_v63 }
 0x3f5   : > { %1449 = vmatpush3.bf16.msra.mxu1 %v1448_v19 }
 0x3f6   : > { %1450 = vmatprep.subr.bf16.mxu1 %v1651_v63 }
 0x3f9   : > { %1452 = vmatpush3.bf16.msra.mxu1 %v1451_v22 }
 0x3fa   : > { %1453 = vmatprep.subr.bf16.mxu1 %v1651_v63 }
 0x3fd   : > { %1455 = vmatpush3.bf16.msra.mxu1 %v1454_v25 }
 0x3fe   : > { %1456 = vmatprep.subr.bf16.mxu1 %v1651_v63 }
 0x401   : > { %1458 = vmatpush3.bf16.msra.mxu1 %v1457_v59 }
 0x402   : > { %1459 = vmatprep.subr.bf16.mxu1 %v1651_v63  ;;  %v982_v63 = vld [vmem:[%s2053_s9] ss:$0 sm:$0xff] }
 0x405   : > { %1461 = vmatpush3.bf16.msra.mxu1 %v1460_v33 }
 0x4b8   : > { %v627_v56 = vpop.f32.mrb[2].mxu1 }
 0x4b9   : > { %v628_v57 = vadd.f32 %v1802_v0, %v627_v56  ;;  %v1264_v60 = vpop.f32.mrb[3].mxu1 }
 0x4bb   : > { %v631_v61 = vsel %vm230_vm2, %v628_v57, -inf }
 0x4bc   : > { %632 = vmax.xlane.f32.xlu0 %v631_v61 }
 0x549   : > { %v633_v62 = vpop.xlane.xlu0 %632 }
 0x54a   : > { %v634_v1 = vsub.f32 %v628_v57, %v633_v62 }
 0x54c   : > { %v635_v2 = vmul.f32 1.442695, %v634_v1  ;;  %v836_v1 = vrot.slane %v1826_v40, 1 }
 0x54e   : > { %1511 = vpow2.f32 %v635_v2 }
 0x558   : > { %v1512_v4 = vpop.eup %1511 }
 0x559   : > { %v637_v5 = vsel %vm230_vm2, %v1512_v4, 0.0 }
 0x55a   : > { %638 = vadd.xlane.f32.xlu0 %v637_v5 }
 0x5e7   : > { %v639_v28 = vpop.xlane.xlu0 %638 }
 0x5e8   : > { %1513 = vrcp.f32 %v639_v28 }
 0x5f2   : > { %v1514_v29 = vpop.eup %1513 }
 0x5f3   : > { %v1980_v30 = vmul.f32 %v1514_v29, %v1512_v4  ;;  %v911_v29 = vrot.slane %v1965_v55, %v880_v12 }
 0x5f5   : > { %1270 = vmatmul.mubr.msk.f32.vlgmr.msra.gmra.mrb[4].mxu0 %vm230_vm2, %v1980_v30  ;;  %v920_v32 = vrot.slane %v1980_v30, %v880_v12  ;;  %v924_v33 = vrot.slane %v1980_v30, %v914_v24 }
 0x6c8   : > { %v713_v34 = vpop.f32.mrb[4].mxu0 }
 0x6c9   : > { %v717_v39 = vadd.f32 %v1965_v55, %v713_v34  ;;  %v1271_v41 = vpop.f32.mrb[5].mxu0 }
 0x6cb   : > { %1305 = vmatmul.mubr.f32.vlgmr.msra.gmra.mrb[4].mxu1 %v717_v39 }
 0x79e   : > { %v807_v42 = vpop.f32.mrb[4].mxu1 }
 0x79f   : > { %v808_v43 = vadd.f32 %v982_v63, %v807_v42  ;;  %v1306_v44 = vpop.f32.mrb[5].mxu1 }
 0x7a1   : > { %811 = vmax.xlane.f32.xlu1 %v808_v43 }
 0x82e   : > { %v812_v45 = vpop.xlane.xlu1 %811 }
 0x82f   : > { %v813_v46 = vsub.f32 %v808_v43, %v812_v45  ;;  %v820_v51 = vsub.f32 %v1635_v58, %v812_v45 }
 0x831   : > { %v814_v47 = vmul.f32 1.442695, %v813_v46 }
 0x833   : > { %1515 = vpow2.f32 %v814_v47 }
 0x83d   : > { %v1516_v48 = vpop.eup %1515 }
 0x83e   : > { %816 = vadd.xlane.f32.xlu1 %v1516_v48 }
 0x8cb   : > { %v817_v49 = vpop.xlane.xlu1 %816 }
 0x8cc   : > { %1517 = vlog2.f32 %v817_v49 }
 0x8d6   : > { %v1518_v50 = vpop.eup %1517 }
 0x8d7   : > { %v819_v52 = vmul.f32 0.6931472, %v1518_v50 }
 0x8d9   : > { %v821_v54 = vsub.f32 %v820_v51, %v819_v52 }
 0x8db   : > { %v822_v56 = vadd.f32 %v821_v54, %v808_v43 }
 0x8dd   : > { %v829_v57 = vsel %vm826_vm6, %v822_v56, -1e+30 }
 0x8de   : > { %v831_v60 = vrot.slane %v829_v57, 1 }
 0x8e0   : > { %v833_v61 = vmax.f32 %v829_v57, %v831_v60  ;;  %vm834_vm8 = vcmp.ge.f32.partialorder %v829_v57, %v831_v60 }
 0x8e1   : > { %v838_v58 = vsel %vm834_vm8, %v1826_v40, %v836_v1 }
 0x8e2   : > { %v840_v62 = vsel %vm839_vm7, %v833_v61, -inf }
 0x8e3   : > { %841 = vmax.xlane.f32.xlu0 %v840_v62 }
 0x970   : > { %v842_v2 = vpop.xlane.xlu0 %841 }
 0x971   : > { %vm843_vm9 = vcmp.eq.f32.partialorder %v833_v61, %v842_v2  ;;  %v881_v13 = vrot.slane %v842_v2, %v880_v12 }
 0x972   : > { %v844_v4 = vsel %vm843_vm9, %v838_v58, 1e+09 }
 0x973   : > { %v845_v5 = vsel %vm839_vm7, %v844_v4, inf }
 0x974   : > { %846 = vmin.xlane.f32.xlu1 %v845_v5 }
 0xa01   : > { %v847_v6 = vpop.xlane.xlu1 %846 }
 0xa02   : > { %v851_v7 = vrot.slane %v847_v6, 7  ;;  %vm848_vm10 = vcmp.eq.f32.partialorder %v1826_v40, %v847_v6  ;;  %v870_v19 = vmul.f32 0.0078125, %v847_v6 }
 0xa03   : > { %v849_v9 = vsel %vm848_vm10, -1e+30, %v829_v57 }
 0xa04   : > { %vm853_vm11 = vcmp.eq.f32.partialorder %v1826_v40, %v851_v7  ;;  %v871_v20 = vfloor.f32 %v870_v19 }
 0xa05   : > { %v854_v8 = vsel %vm853_vm11, -1e+30, %v829_v57 }
 0xa06   : > { %v856_v3 = vrot.slane %v854_v8, 1  ;;  %v872_v22 = vmul.f32 128.0, %v871_v20  ;;  %v899_v27 = vrot.slane %v871_v20, %v880_v12 }
 0xa08   : > { %v858_v10 = vmax.f32 %v849_v9, %v856_v3  ;;  %vm859_vm12 = vcmp.ge.f32.partialorder %v849_v9, %v856_v3  ;;  %v873_v26 = vsub.f32 %v847_v6, %v872_v22 }
 0xa09   : > { %v860_v16 = vsel %vm859_vm12, %v1826_v40, %v836_v1 }
 0xa0a   : > { %v861_v11 = vsel %vm839_vm7, %v858_v10, -inf  ;;  %v890_v41 = vrot.slane %v873_v26, %v880_v12 }
 0xa0b   : > { %862 = vmax.xlane.f32.xlu0 %v861_v11 }
 0xa98   : > { %v863_v14 = vpop.xlane.xlu0 %862 }
 0xa99   : > { %vm864_vm14 = vcmp.eq.f32.partialorder %v858_v10, %v863_v14  ;;  %v885_v15 = vrot.slane %v863_v14, %v880_v12 }
 0xa9a   : > { %v865_v17 = vsel %vm864_vm14, %v860_v16, 1e+09 }
 0xa9b   : > { %v886_v58 = vsel %vm254_vm0, %v881_v13, %v885_v15   ;;  %v866_v18 = vsel %vm839_vm7, %v865_v17, inf }
 0xa9c   : > { %931 = vst.msk [vmem:[%s930_s8] sm:$0xff] %vm928_vm13, %v886_v58  ;;  %867 = vmin.xlane.f32.xlu1 %v866_v18 }
 0xb29   : > { %v868_v21 = vpop.xlane.xlu1 %867 }
 0xb2a   : > { %v874_v23 = vmul.f32 0.0078125, %v868_v21 }
 0xb2c   : > { %v875_v25 = vfloor.f32 %v874_v23 }
 0xb2e   : > { %v876_v59 = vmul.f32 128.0, %v875_v25  ;;  %v903_v28 = vrot.slane %v875_v25, %v880_v12 }
 0xb2f   :  { %262 = sbr.rel (!%p260_p5) target bundleno = 524 (0x20c), region = 111 }
 0xb30   : > { %v877_v34 = vsub.f32 %v868_v21, %v876_v59  ;;  %v904_v39 = vsel %vm254_vm0, %v899_v27, %v903_v28 }
 0xb31   : > { %vm905_vm15 = vcmp.lt.f32.partialorder %v904_v39, 0.5  ;;  %933 = vst.msk [vmem:[%s932_s21] sm:$0xff] %vm928_vm13, %v904_v39 }
 0xb32   : > { %v894_v55 = vrot.slane %v877_v34, %v880_v12  ;;  %v916_v59 = vsel %vm905_vm15, %v911_v29, %v915_v31   ;;  %v925_v63 = vsel %vm905_vm15, %v920_v32, %v924_v33 }
 0xb33   : > { %935 = vst.msk [vmem:[%s934_s4] sm:$0xff] %vm230_vm2, %v925_v63 }
 0xb34   : > { %v895_v57 = vsel %vm254_vm0, %v890_v41, %v894_v55  }
 0xb35   : > { %929 = vst.msk [vmem:[%s927_s28] sm:$0xff] %vm928_vm13, %v895_v57 }
 0xb36   :  { %952 = vsyncpa [#allocation5], 1 }
 0xb37   :  { %953 = vsyncpa [#allocation7], 1 }
 0xb38   :  { %954 = vsyncpa [#allocation10], 1 }

</bundles_post_ra>
